<compile_context>
chip_gen: v5e
topology: v5e:2x2
jax: 0.10.0
libtpu: 0.0.40
codegen_flags: <defaults>
</compile_context>

<pallas_src>
import jax
import jax.numpy as jnp
from jax.experimental import pallas as pl
from jax.experimental.pallas import tpu as pltpu


LANES = 512                   # lane-dense last dim: multiple of 128 -> unmasked vst
MAX_BLOCK_ROWS = 2048         # 2048 x 512 x 4 B = 4 MiB per f32 tile
PALLAS_MIN_ELEMS = 8 * LANES  # below one full (8, 512) slab, plain XLA fusion wins
VMEM_LIMIT_BYTES = 32 << 20   # 2*(in+out) double buffers (16 MiB) fit comfortably


def _round_up(a: int, m: int) -> int:
    return (a + m - 1) // m * m


def linear_kernel(w_ref, b_ref, x_ref, o_ref):
    # y = x * w + b   (in_features == out_features == 1)
    # Scalar broadcast multiply-add on the VPU over a lane-dense tile.
    w = w_ref[0, 0]   # scalar weight from SMEM
    b = b_ref[0]      # scalar bias from SMEM
    o_ref[...] = x_ref[...] * w + b


def linear_forward(x, weight, bias):
    """x: (..., 1) f32, weight: (1, 1) f32, bias: (1,) f32 -> same shape as x.

    Semantics identical to nn.Linear(1, 1): y = x @ W^T + b.
    """
    orig_shape = x.shape
    total = x.size

    # Tiny inputs / non-f32 dtypes: let XLA fuse the scalar FMA.
    # TODO(synk): for bf16/int8 inputs the slab path would need dtype-specific
    # sublane tiling; the fused fallback covers them correctly instead.
    if total < PALLAS_MIN_ELEMS or x.dtype != jnp.float32:
        return (x * weight[0, 0] + bias[0]).reshape(orig_shape)

    # ---- lane-dense slab layout -------------------------------------------
    flat = x.reshape(-1)
    rows = pl.cdiv(total, LANES)
    padded_total = rows * LANES
    needs_pad = padded_total != total
    if needs_pad:
        # Ragged tail: pad only to the next lane multiple (< 2 KiB of pad).
        flat = jnp.pad(flat, (0, padded_total - total))
    slab = flat.reshape(rows, LANES)

    # Tile selection: split into >= 2 grid steps when possible so a megacore
    # (v7x) shards the grid over both TensorCores; cap tiles at 4 MiB.
    if rows <= 2 * MAX_BLOCK_ROWS:
        block_rows = max(8, _round_up(pl.cdiv(rows, 2), 8))
    else:
        block_rows = MAX_BLOCK_ROWS
    block_rows = min(block_rows, MAX_BLOCK_ROWS)

    grid = (pl.cdiv(rows, block_rows),)   # Pallas masks the partial edge block

    out_slab = pl.pallas_call(
        linear_kernel,
        out_shape=jax.ShapeDtypeStruct((rows, LANES), x.dtype),
        grid=grid,
        in_specs=[
            # scalar params live in SMEM, untiled
            pl.BlockSpec(memory_space=pltpu.MemorySpace.SMEM),   # weight (1,1)
            pl.BlockSpec(memory_space=pltpu.MemorySpace.SMEM),   # bias   (1,)
            # lane-dense input tiles, auto-pipelined (double-buffered DMA)
            pl.BlockSpec((block_rows, LANES), lambda i: (i, 0)),
        ],
        out_specs=pl.BlockSpec((block_rows, LANES), lambda i: (i, 0)),
        input_output_aliases={2: 0},        # elementwise: reuse slab's buffer
        compiler_params=pltpu.CompilerParams(
            dimension_semantics=("parallel",),   # v7x: shard grid over 2 TCs
            vmem_limit_bytes=VMEM_LIMIT_BYTES,
        ),
    )(weight, bias, slab)

    if needs_pad:
        return out_slab.reshape(-1)[:total].reshape(orig_shape)
    return out_slab.reshape(orig_shape)   # aligned path: zero-copy reshape back


if __name__ == "__main__":
    key = jax.random.PRNGKey(0)
    kx1, kx2, kx3, kw, kb = jax.random.split(key, 5)

    # nn.Linear(1, 1) parameters: weight (out=1, in=1), bias (1,)
    weight = jax.random.uniform(kw, (1, 1), jnp.float32, minval=-1.0, maxval=1.0)
    bias = jax.random.uniform(kb, (1,), jnp.float32, minval=-1.0, maxval=1.0)

    # Case 1: small batch (fallback path, XLA fusion) — matches module usage.
    x_small = jax.random.normal(kx1, (8, 1), jnp.float32)
    ref_small = x_small @ weight.T + bias
    y_small = linear_forward(x_small, weight, bias)
    jax.block_until_ready(y_small)
    assert y_small.shape == (8, 1)
    assert jnp.allclose(y_small, ref_small, atol=1e-6), "small-N mismatch"

    # Case 2: lane-aligned batch — exercises the no-pad / no-slice fast path.
    x_aligned = jax.random.normal(kx2, (4096, 1), jnp.float32)
    ref_aligned = x_aligned @ weight.T + bias
    y_aligned = linear_forward(x_aligned, weight, bias)
    jax.block_until_ready(y_aligned)
    assert y_aligned.shape == (4096, 1)
    assert jnp.allclose(y_aligned, ref_aligned, atol=1e-6), "aligned-N mismatch"

    # Case 3: ragged batch — exercises minimal pad + partial edge block.
    x_ragged = jax.random.normal(kx3, (5000, 1), jnp.float32)
    ref_ragged = x_ragged @ weight.T + bias
    y_ragged = linear_forward(x_ragged, weight, bias)
    jax.block_until_ready(y_ragged)
    assert y_ragged.shape == (5000, 1)
    assert jnp.allclose(y_ragged, ref_ragged, atol=1e-6), "ragged-N mismatch"

    print("KERNEL_OK")
</pallas_src>

<mosaic_0001>
module attributes {stable_mosaic.version = 11 : i64} {
  func.func @linear_kernel(%arg0: i32, %arg1: memref<1x1xf32, #tpu.memory_space<smem>>, %arg2: memref<1xf32, #tpu.memory_space<smem>>, %arg3: memref<8x512xf32, #tpu.memory_space<vmem>>, %arg4: memref<8x512xf32, #tpu.memory_space<vmem>>) attributes {dimension_semantics = [#tpu.dimension_semantics<parallel>], iteration_bounds = array<i64: 1>, scalar_prefetch = 0 : i64, scratch_operands = 0 : i64, tpu.core_type = #tpu.core_type<tc>, window_params = [{transform_indices = @transform_0, window_bounds = array<i64: 1, 1>}, {transform_indices = @transform_1, window_bounds = array<i64: 1>}, {transform_indices = @transform_2, window_bounds = array<i64: 8, 512>}, {transform_indices = @transform_3, window_bounds = array<i64: 8, 512>}]} {
    %c0 = arith.constant 0 : index
    %c0_0 = arith.constant 0 : index
    %0 = memref.load %arg1[%c0, %c0_0] : memref<1x1xf32, #tpu.memory_space<smem>>
    %c0_1 = arith.constant 0 : index
    %1 = memref.load %arg2[%c0_1] : memref<1xf32, #tpu.memory_space<smem>>
    %c0_2 = arith.constant 0 : index
    %c0_3 = arith.constant 0 : index
    %2 = vector.load %arg3[%c0_2, %c0_3] : memref<8x512xf32, #tpu.memory_space<vmem>>, vector<8x512xf32>
    %3 = vector.broadcast %0 : f32 to vector<8x512xf32>
    %4 = arith.mulf %2, %3 : vector<8x512xf32>
    %5 = vector.broadcast %1 : f32 to vector<8x512xf32>
    %6 = arith.addf %4, %5 : vector<8x512xf32>
    %c0_4 = arith.constant 0 : index
    %c0_5 = arith.constant 0 : index
    %7 = vector.load %arg4[%c0_4, %c0_5] : memref<8x512xf32, #tpu.memory_space<vmem>>, vector<8x512xf32>
    tpu.vector_store %arg4[%c0_4, %c0_5], %6 {strides = array<i32>} : memref<8x512xf32, #tpu.memory_space<vmem>>, vector<8x512xf32>,
    return
  }
  func.func @transform_0(%arg0: i32) -> (i32, i32) {
    %c0_i32 = arith.constant 0 : i32
    %c0_i32_0 = arith.constant 0 : i32
    %c0_i32_1 = arith.constant 0 : i32
    return %c0_i32, %c0_i32_0 : i32, i32
  }
  func.func @transform_1(%arg0: i32) -> i32 {
    %c0_i32 = arith.constant 0 : i32
    %c0_i32_0 = arith.constant 0 : i32
    return %c0_i32 : i32
  }
  func.func @transform_2(%arg0: i32) -> (i32, i32) {
    %c0_i32 = arith.constant 0 : i32
    %c0_i32_0 = arith.constant 0 : i32
    return %arg0, %c0_i32 : i32, i32
  }
  func.func @transform_3(%arg0: i32) -> (i32, i32) {
    %c0_i32 = arith.constant 0 : i32
    %c0_i32_0 = arith.constant 0 : i32
    return %arg0, %c0_i32 : i32, i32
  }
}

</mosaic_0001>

<bundles_post_ra>
// kernel: tpu_custom_call.1
= control target key start
LH: loop header
LB: loop body
LE: loop exit
PB: predicated region body
PF: predicated region fallthrough
CT: control target
= control target key end

     0   :  { %10 = vsyncpa [#allocation5], 0  ;;  %s156_s0 = inlined_call_operand.<no memory space> [shape: f32[1,1], index: 0, kind: input, shape index: {}]   ;;  %s157_s1 = inlined_call_operand.<no memory space> [shape: f32[1], index: 1, kind: input, shape index: {}]   ;;  %s158_s2 = inlined_call_operand.hbm [shape: f32[8,512], index: 2, kind: input, shape index: {}, may-alias: {2,3}]   ;;  %s159_s3 = inlined_call_operand.hbm [shape: f32[8,512], index: 3, kind: output, shape index: {}, may-alias: {2,3}]  }
   0x1   :  { %11 = vsyncpa [#allocation6], 0  ;;  %s21_s14 = sshll.u32 %s158_s2, 4  ;;  %s122_s15 = smov [#allocation4]   ;;  %s22_s14 = int_to_ptr.hbm [resolvable:$true] %s21_s14 }
   0x2   :  { %s23_s16 = sshll.u32 %s122_s15, 4  ;;  %s24_s16 = int_to_ptr.vmem [resolvable:$true] %s23_s16 }
   0x3   :  { %26 = dma.hbm_to_vmem [thread:$0]  %s22_s14, 512, %s24_s16, [#allocation5]  }
   0x4   :  { %118 = dma.done.wait [#allocation5], 512  }
   0x5   :  { %119 = vsyncadd [#allocation5], 4294966784  ;;  %v37_v0 = vstv %s156_s0  ;;  %v33_v1 = vld [vmem:[#allocation4] sm:$0xff]  ;;  %v42_v2 = vstv %s157_s1  ;;  %v34_v3 = vld [vmem:[#allocation4 + $0x8] sm:$0xff]  ;;  %s123_s2 = smov [#allocation7]   ;;  %s58_s0 = sshll.u32 %s159_s3, 4  ;;  %s59_s0 = int_to_ptr.hbm [resolvable:$true] %s58_s0 }
   0x6   :  { %v35_v4 = vld [vmem:[#allocation4 + $0x10] sm:$0xff]  ;;  %v38_v5 = vmul.f32 %v37_v0, %v33_v1  ;;  %v39_v6 = vmul.f32 %v37_v0, %v34_v3  ;;  %v36_v8 = vld [vmem:[#allocation4 + $0x18] sm:$0xff]  ;;  %s56_s21 = sshll.u32 %s123_s2, 4  ;;  %s57_s21 = int_to_ptr.vmem [resolvable:$true] %s56_s21 }
   0x7   :  { %v40_v7 = vmul.f32 %v37_v0, %v35_v4  ;;  %v41_v9 = vmul.f32 %v37_v0, %v36_v8 }
   0x8   :  { %v43_v10 = vadd.f32 %v42_v2, %v38_v5  ;;  %v44_v11 = vadd.f32 %v42_v2, %v39_v6 }
   0x9   :  { %v45_v12 = vadd.f32 %v42_v2, %v40_v7  ;;  %v46_v13 = vadd.f32 %v42_v2, %v41_v9 }
   0xa   :  { %47 = vst [vmem:[#allocation7] sm:$0xff] %v43_v10 }
   0xb   :  { %48 = vst [vmem:[#allocation7 + $0x8] sm:$0xff] %v44_v11 }
   0xc   :  { %49 = vst [vmem:[#allocation7 + $0x10] sm:$0xff] %v45_v12 }
   0xd   :  { %50 = vst [vmem:[#allocation7 + $0x18] sm:$0xff] %v46_v13 }
   0xe   :  { %61 = dma.vmem_to_hbm [thread:$0]  %s57_s21, 512, %s59_s0, [#allocation6]  }
   0xf   :  { %120 = dma.done.wait [#allocation6], 512  }
  0x10   :  { %121 = vsyncadd [#allocation6], 4294966784 }
  0x11   :  { %66 = vsyncpa [#allocation5], 1 }
  0x12   :  { %67 = vsyncpa [#allocation6], 1 }

</bundles_post_ra>
